<compile_context>
chip_gen: v5e
topology: v5e:2x2
jax: 0.10.0
libtpu: 0.0.40
codegen_flags: <defaults>
</compile_context>

<pallas_src>
import jax
import jax.numpy as jnp
from jax.experimental import pallas as pl
from jax.experimental.pallas import tpu as pltpu


def _logreg_kernel(xT_ref, wT_ref, b_ref, o_ref):
    """xT_ref: (D, TN) VMEM, wT_ref: (D, O) VMEM, b_ref: (O,) SMEM, o_ref: (O, TN)."""
    xT = xT_ref[...]                                   # (D, TN), batch on lanes
    n_out = o_ref.shape[0]                             # O is tiny -> unrolled
    for j in range(n_out):
        w_col = wT_ref[:, j:j + 1]                     # (D, 1), lane-broadcast weight
        # VPU multiply + XLU sublane reduce; skip the MXU for this tiny K=D dot.
        z = jnp.sum(xT * w_col, axis=0, keepdims=True) + b_ref[j]   # (1, TN) f32
        o_ref[j:j + 1, :] = jax.nn.sigmoid(z)          # EUP exp, f32 path


def logistic_regression_forward(x, weight, bias, *, max_tile_n=1024):
    """y = sigmoid(x @ weight.T + bias); x (N, D), weight (O, D), bias (O,)."""
    n, d = x.shape
    o = weight.shape[0]

    x = x.astype(jnp.float32)
    wT = weight.astype(jnp.float32).T                  # (D, O): transposed once, outside
    b = bias.astype(jnp.float32).reshape(o)            # (O,) scalars -> SMEM

    # Batch -> lane axis, padded so every tile is lane-dense (multiple of 128).
    n_pad = ((n + 127) // 128) * 128
    tn = min(max_tile_n, n_pad)                        # lane tile, multiple of 128
    n_pad = ((n_pad + tn - 1) // tn) * tn              # make n_pad a multiple of tn
    xT = jnp.pad(x, ((0, n_pad - n), (0, 0))).T        # (D, N_pad)

    out_shape = jax.ShapeDtypeStruct((o, n_pad), jnp.float32)
    smem_spec = pl.BlockSpec(memory_space=pltpu.MemorySpace.SMEM)
    vmem_spec = pl.BlockSpec(memory_space=pltpu.MemorySpace.VMEM)

    grid_n = n_pad // tn
    if grid_n == 1:
        # Whole problem fits in a single lane tile: no grid loop at all.
        yT = pl.pallas_call(
            _logreg_kernel,
            out_shape=out_shape,
            in_specs=[vmem_spec, vmem_spec, smem_spec],
            out_specs=vmem_spec,
        )(xT, wT, b)
    else:
        # Tile over the batch (lane) axis. Per-tile VMEM is d * tn * 4B with
        # double buffering -> tiny even under v7x's 64 MiB VMEM budget.
        yT = pl.pallas_call(
            _logreg_kernel,
            out_shape=out_shape,
            grid=(grid_n,),
            in_specs=[
                pl.BlockSpec((d, tn), lambda i: (0, i)),   # x^T tile, batch on lanes
                pl.BlockSpec((d, o), lambda i: (0, 0)),    # full (pre-transposed) weight
                smem_spec,                                  # bias scalars in SMEM
            ],
            out_specs=pl.BlockSpec((o, tn), lambda i: (0, i)),
            compiler_params=pltpu.CompilerParams(
                # Independent batch tiles -> v7x's 2 TensorCores split the work.
                dimension_semantics=("parallel",),
            ),
        )(xT, wT, b)

    # (O, N_pad) -> (N, O): drop padding, put batch back on rows (layout plumbing).
    return yT[:, :n].T


if __name__ == "__main__":
    # Spec module: 10 feature columns -> input_dim=10, output_dim=1 (binary prob).
    input_dim, output_dim = 10, 1
    batch = 8

    key = jax.random.PRNGKey(0)
    kx, kw, kb = jax.random.split(key, 3)

    x = jax.random.normal(kx, (batch, input_dim), dtype=jnp.float32)
    # Mimic nn.Linear's uniform(-1/sqrt(d), 1/sqrt(d)) init, deterministically.
    bound = 1.0 / (input_dim ** 0.5)
    weight = jax.random.uniform(
        kw, (output_dim, input_dim), minval=-bound, maxval=bound, dtype=jnp.float32
    )
    bias = jax.random.uniform(
        kb, (output_dim,), minval=-bound, maxval=bound, dtype=jnp.float32
    )

    # Small-batch path (single lane tile, gridless pallas_call).
    y = logistic_regression_forward(x, weight, bias)
    jax.block_until_ready(y)
    y_ref = jax.nn.sigmoid(x @ weight.T + bias)
    assert y.shape == (batch, output_dim)
    assert jnp.allclose(y, y_ref, atol=1e-5, rtol=1e-5)

    # Larger batch exercising the tiled ("parallel" grid) path with a small tile.
    batch2 = 300
    x2 = jax.random.normal(jax.random.PRNGKey(1), (batch2, input_dim), dtype=jnp.float32)
    y2 = logistic_regression_forward(x2, weight, bias, max_tile_n=128)
    jax.block_until_ready(y2)
    y2_ref = jax.nn.sigmoid(x2 @ weight.T + bias)
    assert y2.shape == (batch2, output_dim)
    assert jnp.allclose(y2, y2_ref, atol=1e-5, rtol=1e-5)

    print("KERNEL_OK")
</pallas_src>

<mosaic_0001>
module attributes {stable_mosaic.version = 11 : i64} {
  func.func @_logreg_kernel(%arg0: memref<10x128xf32, #tpu.memory_space<vmem>>, %arg1: memref<10x1xf32, #tpu.memory_space<vmem>>, %arg2: memref<1xf32, #tpu.memory_space<smem>>, %arg3: memref<1x128xf32, #tpu.memory_space<vmem>>) attributes {dimension_semantics = [], scalar_prefetch = 0 : i64, scratch_operands = 0 : i64, tpu.core_type = #tpu.core_type<tc>} {
    %c0 = arith.constant 0 : index
    %c0_0 = arith.constant 0 : index
    %0 = vector.load %arg0[%c0, %c0_0] : memref<10x128xf32, #tpu.memory_space<vmem>>, vector<10x128xf32>
    %c0_1 = arith.constant 0 : index
    %c0_2 = arith.constant 0 : index
    %1 = vector.load %arg1[%c0_1, %c0_2] : memref<10x1xf32, #tpu.memory_space<vmem>>, vector<10x1xf32>
    %2 = vector.broadcast %1 : vector<10x1xf32> to vector<10x128xf32>
    %3 = arith.mulf %0, %2 : vector<10x128xf32>
    %cst = arith.constant dense<0.000000e+00> : vector<128xf32>
    %4 = vector.multi_reduction <add>, %3, %cst [0] : vector<10x128xf32> to vector<128xf32>
    %5 = vector.shape_cast %4 : vector<128xf32> to vector<1x128xf32>
    %c0_3 = arith.constant 0 : index
    %6 = memref.load %arg2[%c0_3] : memref<1xf32, #tpu.memory_space<smem>>
    %7 = vector.broadcast %6 : f32 to vector<1x128xf32>
    %8 = arith.addf %5, %7 : vector<1x128xf32>
    %9 = arith.negf %8 : vector<1x128xf32>
    %10 = math.exp %9 : vector<1x128xf32>
    %cst_4 = arith.constant 1.000000e+00 : f32
    %11 = vector.broadcast %cst_4 : f32 to vector<1x128xf32>
    %12 = arith.addf %11, %10 : vector<1x128xf32>
    %13 = arith.divf %11, %12 : vector<1x128xf32>
    %c0_5 = arith.constant 0 : index
    %c0_6 = arith.constant 0 : index
    %14 = vector.load %arg3[%c0_5, %c0_6] : memref<1x128xf32, #tpu.memory_space<vmem>>, vector<1x128xf32>
    tpu.vector_store %arg3[%c0_5, %c0_6], %13 {strides = array<i32>} : memref<1x128xf32, #tpu.memory_space<vmem>>, vector<1x128xf32>,
    return
  }
}

</mosaic_0001>

<bundles_post_ra>
// kernel: tpu_custom_call.1
= control target key start
LH: loop header
LB: loop body
LE: loop exit
PB: predicated region body
PF: predicated region fallthrough
CT: control target
= control target key end

     0   :  { %v114_v1 = vmov 0   ;;  %s154_s0 = inlined_call_operand.vmem [shape: f32[10,128], index: 0, kind: input, shape index: {}]   ;;  %s155_s1 = inlined_call_operand.vmem [shape: f32[10,1], index: 1, kind: input, shape index: {}]   ;;  %s156_s2 = inlined_call_operand.<no memory space> [shape: f32[1], index: 2, kind: input, shape index: {}]   ;;  %s157_s3 = inlined_call_operand.hbm [shape: f32[1,128], index: 3, kind: output, shape index: {}]  }
   0x1   :  { %v19_v0 = vld [vmem:[%s155_s1 + $0x8] sm:$0x3]  ;;  %83 = vset.pattern.permute.xlu0 %v114_v1 }
   0x2   :  { %9 = vsyncpa [#allocation4], 0  ;;  %27 = vperm.xlu0 %83, %v19_v0   ;;  %v18_v2 = vld [vmem:[%s155_s1] sm:$0xff]  ;;  %v17_v4 = vld [vmem:[%s154_s0 + $0x8] sm:$0x3]  ;;  %vm32_vm0 = vcmask 1041408   ;;  %v42_v16 = vstv %s156_s2 }
   0x3   :  { %v16_v6 = vld [vmem:[%s154_s0] sm:$0xff]  ;;  %s115_s0 = smov [#allocation3]   ;;  %s71_s2 = sshll.u32 %s157_s3, 4  ;;  %s72_s2 = int_to_ptr.hbm [resolvable:$true] %s71_s2 }
   0x4   :  { %s69_s21 = sshll.u32 %s115_s0, 4  ;;  %s70_s21 = int_to_ptr.vmem [resolvable:$true] %s69_s21 }
   0xa   :  { %22 = vperm.xlu0 %83, %v18_v2  }
  0x74   :  { %v28_v3 = vpop.permute.xlu0 %27 }
  0x75   :  { %v31_v5 = vmul.f32 %v28_v3, %v17_v4 }
  0x77   :  { %v33_v9 = vsel %vm32_vm0, %v31_v5, 0.0 }
  0x7c   :  { %v23_v7 = vpop.permute.xlu0 %22 }
  0x7d   :  { %v30_v8 = vmul.f32 %v23_v7, %v16_v6 }
  0x7f   :  { %v34_v10 = vadd.f32 %v33_v9, %v30_v8 }
  0x81   :  { %v35_v11 = vrot.slane %v34_v10, 4 }
  0x83   :  { %v36_v12 = vadd.f32 %v35_v11, %v34_v10 }
  0x85   :  { %v37_v13 = vrot.slane %v36_v12, 2 }
  0x87   :  { %v38_v14 = vadd.f32 %v37_v13, %v36_v12 }
  0x89   :  { %v39_v15 = vrot.slane %v38_v14, 1 }
  0x8b   :  { %v40_v17 = vadd.f32 %v39_v15, %v38_v14 }
  0x8d   :  { %v43_v18 = vadd.f32 %v42_v16, %v40_v17 }
  0x8f   :  { %v80_v19 = vmul.f32 -1.442695, %v43_v18 }
  0x91   :  { %84 = vpow2.f32 %v80_v19 }
  0x97   :  { %v85_v20 = vpop.eup %84 }
  0x98   :  { %v47_v21 = vadd.f32 1.0, %v85_v20 }
  0x9a   :  { %86 = vrcp.f32 %v47_v21  ;;  %v59_v25 = vand.u32 2147483648, %v47_v21  ;;  %v57_v27 = vand.u32 2147483647, %v47_v21  ;;  %vm53_vm2 = vweird.f32 %v47_v21 }
  0x9c   :  { %v60_v29 = vor.u32 1.1754944e-38, %v59_v25  ;;  %vm58_vm4 = vcmp.eq.f32.partialorder %v57_v27, 8.507059e+37 }
  0xa0   :  { %v87_v22 = vpop.eup %86 }
  0xa1   :  { %v49_v23 = vmul.f32 %v87_v22, %v47_v21  ;;  %vm54_vm1 = vweird.f32 %v87_v22 }
  0xa2   :  { %vm55_vm3 = vmor %vm53_vm2, %vm54_vm1 }
  0xa3   :  { %v50_v24 = vsub.f32 1.0, %v49_v23 }
  0xa5   :  { %v51_v26 = vmul.f32 %v87_v22, %v50_v24 }
  0xa7   :  { %v52_v28 = vadd.f32 %v87_v22, %v51_v26 }
  0xa9   :  { %v56_v30 = vsel %vm55_vm3, %v87_v22, %v52_v28 }
  0xaa   :  { %v61_v31 = vsel %vm58_vm4, %v60_v29, %v56_v30 }
  0xab   :  { %63 = vst [vmem:[#allocation3] sm:$0x1] %v61_v31 }
  0xac   :  { %74 = dma.vmem_to_hbm [thread:$0]  %s70_s21, 16, %s72_s2, [#allocation4]  }
  0xad   :  { %112 = dma.done.wait [#allocation4], 16  }
  0xae   :  { %113 = vsyncadd [#allocation4], 4294967280 }
  0xaf   :  { %79 = vsyncpa [#allocation4], 1 }

</bundles_post_ra>
